<compile_context>
chip_gen: v7x
topology: tpu7x:2x2x1
jax: 0.10.0
libtpu: 0.0.40
codegen_flags: <defaults>
</compile_context>

<pallas_src>
import numpy as np
import jax
import jax.numpy as jnp
from jax.experimental import pallas as pl
from jax.experimental.pallas import tpu as pltpu

_EPS = 1e-5
_TOP = 16  # interior of the conv1->conv2 scratch starts at a bf16-tile-aligned row


# ----------------------------- Pallas kernel -----------------------------

def _make_kernel(H, W, Cout):
    WCo = W * Cout

    def kernel(x_ref, m1_ref, b1_ref, m2_ref, b2_ref, msc_ref, bsc_ref,
               out_ref, pad1_ref):
        # Zero only the two halo rows (above / below the interior).  Done every
        # step (2 rows, negligible) instead of a full zero-fill, and without
        # relying on program_id==0 so "parallel" sharding on v7x stays correct.
        zrow = jnp.zeros((1, WCo), pad1_ref.dtype)
        pad1_ref[_TOP - 1:_TOP, :] = zrow
        pad1_ref[_TOP + H:_TOP + H + 1, :] = zrow

        # ---- conv1 + BN1 + ReLU: 3 row-slab matmuls, K = (W+2)*Cin ----
        acc1 = jnp.zeros((H, WCo), jnp.float32)
        for dy in range(3):
            acc1 = acc1 + jnp.dot(x_ref[dy:dy + H, :], m1_ref[dy],
                                  preferred_element_type=jnp.float32)
        out1 = jnp.maximum(acc1 + b1_ref[...], 0.0)
        # aligned interior, full lane width -> unmasked store
        pad1_ref[_TOP:_TOP + H, :] = out1.astype(pad1_ref.dtype)

        # ---- conv2 + BN2: 3 row-slab matmuls, K = W*Cout ----
        acc2 = jnp.zeros((H, WCo), jnp.float32)
        for dy in range(3):
            acc2 = acc2 + jnp.dot(
                pad1_ref[_TOP - 1 + dy:_TOP - 1 + dy + H, :], m2_ref[dy],
                preferred_element_type=jnp.float32)
        acc2 = acc2 + b2_ref[...]

        # ---- shortcut (1x1 conv + BN, or identity) as one band matmul ----
        sc = jnp.dot(x_ref[1:H + 1, :], msc_ref[...],
                     preferred_element_type=jnp.float32) + bsc_ref[...]

        out_ref[...] = jnp.maximum(acc2 + sc, 0.0).astype(out_ref.dtype)

    return kernel


def resnet_block_forward(x_nchw, kp):
    """x_nchw: (N, Cin, H, W) float32 -> (N, Cout, H, W) float32."""
    N, Cin, H, W = x_nchw.shape
    Cout = int(kp["cout"])
    WCo = W * Cout
    WpCi = (W + 2) * Cin

    # NCHW -> NHWC, pad spatial by 1, fold (W+2, Cin) into the lane dim, bf16.
    x = jnp.transpose(x_nchw, (0, 2, 3, 1))
    xpad = jnp.pad(x, ((0, 0), (1, 1), (1, 1), (0, 0)))
    xpad = xpad.reshape(N, H + 2, WpCi).astype(jnp.bfloat16)

    grid_spec = pltpu.PrefetchScalarGridSpec(
        num_scalar_prefetch=0,
        grid=(N,),
        in_specs=[
            pl.BlockSpec((None, H + 2, WpCi), lambda n: (n, 0, 0)),  # x rows
            pl.BlockSpec((3, WpCi, WCo), lambda n: (0, 0, 0)),       # m1 bands
            pl.BlockSpec((1, WCo), lambda n: (0, 0)),                # b1
            pl.BlockSpec((3, WCo, WCo), lambda n: (0, 0, 0)),        # m2 bands
            pl.BlockSpec((1, WCo), lambda n: (0, 0)),                # b2
            pl.BlockSpec((WpCi, WCo), lambda n: (0, 0)),             # msc band
            pl.BlockSpec((1, WCo), lambda n: (0, 0)),                # bsc
        ],
        out_specs=pl.BlockSpec((None, H, WCo), lambda n: (n, 0, 0)),
        scratch_shapes=[pltpu.VMEM((_TOP + H + 1, WCo), jnp.bfloat16)],
    )

    out = pl.pallas_call(
        _make_kernel(H, W, Cout),
        out_shape=jax.ShapeDtypeStruct((N, H, WCo), jnp.float32),
        grid_spec=grid_spec,
        compiler_params=pltpu.CompilerParams(
            dimension_semantics=("parallel",),
            vmem_limit_bytes=32 * 1024 * 1024),
    )(xpad, kp["m1"], kp["b1"], kp["m2"], kp["b2"], kp["msc"], kp["bsc"])

    out = out.reshape(N, H, W, Cout)          # un-fold lanes -> (W, Cout)
    return jnp.transpose(out, (0, 3, 1, 2))   # back to NCHW


# --------------------- parameter prep (host-side, once) ---------------------

def _fold_bn(gamma, beta, mean, var, conv_bias):
    scale = np.asarray(gamma, np.float32) / np.sqrt(np.asarray(var, np.float32) + _EPS)
    bias = np.asarray(beta, np.float32) + scale * (
        np.asarray(conv_bias, np.float32) - np.asarray(mean, np.float32))
    return scale, bias


def _band_3x3(w_hwio, scale_co, W, in_padded):
    """Per-dy banded matrices: a 3x3 conv over the W axis as a (rows, W*C) matmul.

    Returns (3, Win*Ci, W*Co), Win = W+2 (padded input rows) or W (W-padding
    absorbed as missing bands).  BN scale is folded along output channels.
    """
    w = np.asarray(w_hwio, np.float32) * scale_co[None, None, None, :]
    _, _, Ci, Co = w.shape
    Win = W + 2 if in_padded else W
    off = 0 if in_padded else -1
    M = np.zeros((3, Win * Ci, W * Co), np.float32)
    for dy in range(3):
        for dx in range(3):
            for x in range(W):
                xin = x + dx + off
                if 0 <= xin < Win:
                    M[dy, xin * Ci:(xin + 1) * Ci, x * Co:(x + 1) * Co] = w[dy, dx]
    return M


def _band_1x1(w_io, scale_co, W):
    """1x1 conv on spatially padded rows ((W+2)*Ci lanes) -> (W*Co lanes)."""
    w = np.asarray(w_io, np.float32) * scale_co[None, :]
    Ci, Co = w.shape
    M = np.zeros(((W + 2) * Ci, W * Co), np.float32)
    for x in range(W):
        M[(x + 1) * Ci:(x + 2) * Ci, x * Co:(x + 1) * Co] = w
    return M


def prepare_kernel_params(raw, W):
    Cin = raw["w1"].shape[2]
    Cout = raw["w1"].shape[3]

    s1, b1 = _fold_bn(raw["g1"], raw["be1"], raw["m1"], raw["v1"], raw["b1"])
    s2, b2 = _fold_bn(raw["g2"], raw["be2"], raw["m2"], raw["v2"], raw["b2"])
    if raw["has_proj"]:
        ssc, bsc = _fold_bn(raw["gsc"], raw["besc"], raw["msc"], raw["vsc"],
                            raw["bsc"])
        wsc = raw["wsc"]
    else:
        # Identity shortcut expressed as an identity 1x1 band (keeps one code
        # path and avoids misaligned lane slices of the flattened input).
        ssc = np.ones((Cout,), np.float32)
        bsc = np.zeros((Cout,), np.float32)
        wsc = np.eye(Cin, dtype=np.float32)

    return {
        "cout": Cout,
        "m1": jnp.asarray(_band_3x3(raw["w1"], s1, W, in_padded=True), jnp.bfloat16),
        "m2": jnp.asarray(_band_3x3(raw["w2"], s2, W, in_padded=False), jnp.bfloat16),
        "msc": jnp.asarray(_band_1x1(wsc, ssc, W), jnp.bfloat16),
        "b1": jnp.asarray(np.tile(b1, W)[None, :], jnp.float32),
        "b2": jnp.asarray(np.tile(b2, W)[None, :], jnp.float32),
        "bsc": jnp.asarray(np.tile(bsc, W)[None, :], jnp.float32),
    }


# ---------------- parameter init (deterministic, synthetic) ----------------

def init_params(key, Cin, Cout):
    ks = jax.random.split(key, 18)
    n = lambda k, shape, s=0.1: s * jax.random.normal(k, shape, jnp.float32)

    raw = {"has_proj": Cin != Cout}
    # conv1 + bn1
    raw["w1"] = n(ks[0], (3, 3, Cin, Cout))
    raw["b1"] = n(ks[1], (Cout,))
    raw["g1"] = 1.0 + n(ks[2], (Cout,))
    raw["be1"] = n(ks[3], (Cout,))
    raw["m1"] = n(ks[4], (Cout,))
    raw["v1"] = 1.0 + jnp.abs(n(ks[5], (Cout,)))
    # conv2 + bn2
    raw["w2"] = n(ks[6], (3, 3, Cout, Cout))
    raw["b2"] = n(ks[7], (Cout,))
    raw["g2"] = 1.0 + n(ks[8], (Cout,))
    raw["be2"] = n(ks[9], (Cout,))
    raw["m2"] = n(ks[10], (Cout,))
    raw["v2"] = 1.0 + jnp.abs(n(ks[11], (Cout,)))
    # shortcut 1x1 conv + bn
    raw["wsc"] = n(ks[12], (Cin, Cout))
    raw["bsc"] = n(ks[13], (Cout,))
    raw["gsc"] = 1.0 + n(ks[14], (Cout,))
    raw["besc"] = n(ks[15], (Cout,))
    raw["msc"] = n(ks[16], (Cout,))
    raw["vsc"] = 1.0 + jnp.abs(n(ks[17], (Cout,)))
    return raw


# ---------------- pure-JAX reference (eval-mode BN) ----------------

def resnet_block_ref(x_nchw, raw):
    def conv(x, w, b):  # NHWC, HWIO
        y = jax.lax.conv_general_dilated(
            x, w, (1, 1), "SAME",
            dimension_numbers=("NHWC", "HWIO", "NHWC"),
            precision=jax.lax.Precision.HIGHEST)
        return y + b

    def bn(x, g, be, m, v):
        return (x - m) / jnp.sqrt(v + _EPS) * g + be

    x = jnp.transpose(x_nchw, (0, 2, 3, 1))
    out = jax.nn.relu(bn(conv(x, raw["w1"], raw["b1"]),
                         raw["g1"], raw["be1"], raw["m1"], raw["v1"]))
    out = bn(conv(out, raw["w2"], raw["b2"]),
             raw["g2"], raw["be2"], raw["m2"], raw["v2"])
    if raw["has_proj"]:
        sc = bn(conv(x, raw["wsc"][None, None], raw["bsc"]),
                raw["gsc"], raw["besc"], raw["msc"], raw["vsc"])
    else:
        sc = x
    out = jax.nn.relu(out + sc)
    return jnp.transpose(out, (0, 3, 1, 2))


if __name__ == "__main__":
    N, Cin, Cout, H, W = 2, 4, 8, 16, 16
    key = jax.random.PRNGKey(0)
    kx, kp_key = jax.random.split(key)
    x = jax.random.normal(kx, (N, Cin, H, W), jnp.float32)

    raw = init_params(kp_key, Cin, Cout)
    kparams = prepare_kernel_params(raw, W)

    out = resnet_block_forward(x, kparams)
    out = jax.block_until_ready(out)

    ref = resnet_block_ref(x, raw)
    assert out.shape == (N, Cout, H, W), out.shape
    # bf16 activations/weights (f32 MXU accumulation) -> slightly looser
    # tolerance than the previous all-f32 kernel.
    assert jnp.allclose(out, ref, rtol=3e-2, atol=3e-2), float(
        jnp.max(jnp.abs(out - ref)))
    print("KERNEL_OK")
</pallas_src>

<mosaic_0001>
module attributes {stable_mosaic.version = 11 : i64} {
  func.func @kernel(%arg0: i32, %arg1: memref<1x18x72xbf16, #tpu.memory_space<vmem>>, %arg2: memref<3x72x128xbf16, #tpu.memory_space<vmem>>, %arg3: memref<1x128xf32, #tpu.memory_space<vmem>>, %arg4: memref<3x128x128xbf16, #tpu.memory_space<vmem>>, %arg5: memref<1x128xf32, #tpu.memory_space<vmem>>, %arg6: memref<72x128xbf16, #tpu.memory_space<vmem>>, %arg7: memref<1x128xf32, #tpu.memory_space<vmem>>, %arg8: memref<1x16x128xf32, #tpu.memory_space<vmem>>, %arg9: memref<33x128xbf16, #tpu.memory_space<vmem>>) attributes {dimension_semantics = [#tpu.dimension_semantics<parallel>], iteration_bounds = array<i64: 2>, scalar_prefetch = 0 : i64, scratch_operands = 1 : i64, tpu.core_type = #tpu.core_type<tc>, window_params = [{transform_indices = @transform_0, window_bounds = array<i64: 1, 18, 72>}, {pipeline_mode = #tpu.pipeline_mode<synchronous>, transform_indices = @transform_1, window_bounds = array<i64: 3, 72, 128>}, {pipeline_mode = #tpu.pipeline_mode<synchronous>, transform_indices = @transform_2, window_bounds = array<i64: 1, 128>}, {pipeline_mode = #tpu.pipeline_mode<synchronous>, transform_indices = @transform_3, window_bounds = array<i64: 3, 128, 128>}, {pipeline_mode = #tpu.pipeline_mode<synchronous>, transform_indices = @transform_4, window_bounds = array<i64: 1, 128>}, {pipeline_mode = #tpu.pipeline_mode<synchronous>, transform_indices = @transform_5, window_bounds = array<i64: 72, 128>}, {pipeline_mode = #tpu.pipeline_mode<synchronous>, transform_indices = @transform_6, window_bounds = array<i64: 1, 128>}, {transform_indices = @transform_7, window_bounds = array<i64: 1, 16, 128>}]} {
    %cst = arith.constant 0.000000e+00 : bf16
    %0 = vector.broadcast %cst : bf16 to vector<1x128xbf16>
    %c15 = arith.constant 15 : index
    %c0 = arith.constant 0 : index
    %1 = vector.load %arg9[%c15, %c0] : memref<33x128xbf16, #tpu.memory_space<vmem>>, vector<1x128xbf16>
    tpu.vector_store %arg9[%c15, %c0], %0 {strides = array<i32>} : memref<33x128xbf16, #tpu.memory_space<vmem>>, vector<1x128xbf16>,
    %c32 = arith.constant 32 : index
    %c0_0 = arith.constant 0 : index
    %2 = vector.load %arg9[%c32, %c0_0] : memref<33x128xbf16, #tpu.memory_space<vmem>>, vector<1x128xbf16>
    tpu.vector_store %arg9[%c32, %c0_0], %0 {strides = array<i32>} : memref<33x128xbf16, #tpu.memory_space<vmem>>, vector<1x128xbf16>,
    %cst_1 = arith.constant 0.000000e+00 : f32
    %3 = vector.broadcast %cst_1 : f32 to vector<16x128xf32>
    %c0_2 = arith.constant 0 : index
    %c0_3 = arith.constant 0 : index
    %c0_4 = arith.constant 0 : index
    %4 = vector.load %arg1[%c0_2, %c0_3, %c0_4] : memref<1x18x72xbf16, #tpu.memory_space<vmem>>, vector<1x16x72xbf16>
    %5 = vector.shape_cast %4 : vector<1x16x72xbf16> to vector<16x72xbf16>
    %c0_5 = arith.constant 0 : index
    %c0_6 = arith.constant 0 : index
    %c0_7 = arith.constant 0 : index
    %6 = vector.load %arg2[%c0_5, %c0_6, %c0_7] : memref<3x72x128xbf16, #tpu.memory_space<vmem>>, vector<1x72x128xbf16>
    %7 = vector.shape_cast %6 : vector<1x72x128xbf16> to vector<72x128xbf16>
    %cst_8 = arith.constant dense<0.000000e+00> : vector<16x128xf32>
    %8 = tpu.matmul %5, %7, %cst_8 {dimension_numbers = #tpu.dot_dimension_numbers<[1], [0], [0], [1], [0, 0, 1, 1], [], []>} : vector<16x72xbf16>, vector<72x128xbf16>, vector<16x128xf32> -> vector<16x128xf32>
    %9 = arith.addf %3, %8 : vector<16x128xf32>
    %c0_9 = arith.constant 0 : index
    %c1 = arith.constant 1 : index
    %c0_10 = arith.constant 0 : index
    %10 = vector.load %arg1[%c0_9, %c1, %c0_10] : memref<1x18x72xbf16, #tpu.memory_space<vmem>>, vector<1x16x72xbf16>
    %11 = vector.shape_cast %10 : vector<1x16x72xbf16> to vector<16x72xbf16>
    %c1_11 = arith.constant 1 : index
    %c0_12 = arith.constant 0 : index
    %c0_13 = arith.constant 0 : index
    %12 = vector.load %arg2[%c1_11, %c0_12, %c0_13] : memref<3x72x128xbf16, #tpu.memory_space<vmem>>, vector<1x72x128xbf16>
    %13 = vector.shape_cast %12 : vector<1x72x128xbf16> to vector<72x128xbf16>
    %cst_14 = arith.constant dense<0.000000e+00> : vector<16x128xf32>
    %14 = tpu.matmul %11, %13, %cst_14 {dimension_numbers = #tpu.dot_dimension_numbers<[1], [0], [0], [1], [0, 0, 1, 1], [], []>} : vector<16x72xbf16>, vector<72x128xbf16>, vector<16x128xf32> -> vector<16x128xf32>
    %15 = arith.addf %9, %14 : vector<16x128xf32>
    %c0_15 = arith.constant 0 : index
    %c2 = arith.constant 2 : index
    %c0_16 = arith.constant 0 : index
    %16 = vector.load %arg1[%c0_15, %c2, %c0_16] : memref<1x18x72xbf16, #tpu.memory_space<vmem>>, vector<1x16x72xbf16>
    %17 = vector.shape_cast %16 : vector<1x16x72xbf16> to vector<16x72xbf16>
    %c2_17 = arith.constant 2 : index
    %c0_18 = arith.constant 0 : index
    %c0_19 = arith.constant 0 : index
    %18 = vector.load %arg2[%c2_17, %c0_18, %c0_19] : memref<3x72x128xbf16, #tpu.memory_space<vmem>>, vector<1x72x128xbf16>
    %19 = vector.shape_cast %18 : vector<1x72x128xbf16> to vector<72x128xbf16>
    %cst_20 = arith.constant dense<0.000000e+00> : vector<16x128xf32>
    %20 = tpu.matmul %17, %19, %cst_20 {dimension_numbers = #tpu.dot_dimension_numbers<[1], [0], [0], [1], [0, 0, 1, 1], [], []>} : vector<16x72xbf16>, vector<72x128xbf16>, vector<16x128xf32> -> vector<16x128xf32>
    %21 = arith.addf %15, %20 : vector<16x128xf32>
    %c0_21 = arith.constant 0 : index
    %c0_22 = arith.constant 0 : index
    %22 = vector.load %arg3[%c0_21, %c0_22] : memref<1x128xf32, #tpu.memory_space<vmem>>, vector<1x128xf32>
    %23 = vector.broadcast %22 : vector<1x128xf32> to vector<16x128xf32>
    %24 = arith.addf %21, %23 : vector<16x128xf32>
    %cst_23 = arith.constant 0.000000e+00 : f32
    %25 = vector.broadcast %cst_23 : f32 to vector<16x128xf32>
    %26 = arith.maximumf %24, %25 : vector<16x128xf32>
    %27 = arith.truncf %26 : vector<16x128xf32> to vector<16x128xbf16>
    %c16 = arith.constant 16 : index
    %c0_24 = arith.constant 0 : index
    %28 = vector.load %arg9[%c16, %c0_24] : memref<33x128xbf16, #tpu.memory_space<vmem>>, vector<16x128xbf16>
    tpu.vector_store %arg9[%c16, %c0_24], %27 {strides = array<i32>} : memref<33x128xbf16, #tpu.memory_space<vmem>>, vector<16x128xbf16>,
    %cst_25 = arith.constant 0.000000e+00 : f32
    %29 = vector.broadcast %cst_25 : f32 to vector<16x128xf32>
    %c15_26 = arith.constant 15 : index
    %c0_27 = arith.constant 0 : index
    %30 = vector.load %arg9[%c15_26, %c0_27] : memref<33x128xbf16, #tpu.memory_space<vmem>>, vector<16x128xbf16>
    %c0_28 = arith.constant 0 : index
    %c0_29 = arith.constant 0 : index
    %c0_30 = arith.constant 0 : index
    %31 = vector.load %arg4[%c0_28, %c0_29, %c0_30] : memref<3x128x128xbf16, #tpu.memory_space<vmem>>, vector<1x128x128xbf16>
    %32 = vector.shape_cast %31 : vector<1x128x128xbf16> to vector<128x128xbf16>
    %cst_31 = arith.constant dense<0.000000e+00> : vector<16x128xf32>
    %33 = tpu.matmul %30, %32, %cst_31 {dimension_numbers = #tpu.dot_dimension_numbers<[1], [0], [0], [1], [0, 0, 1, 1], [], []>} : vector<16x128xbf16>, vector<128x128xbf16>, vector<16x128xf32> -> vector<16x128xf32>
    %34 = arith.addf %29, %33 : vector<16x128xf32>
    %c16_32 = arith.constant 16 : index
    %c0_33 = arith.constant 0 : index
    %35 = vector.load %arg9[%c16_32, %c0_33] : memref<33x128xbf16, #tpu.memory_space<vmem>>, vector<16x128xbf16>
    %c1_34 = arith.constant 1 : index
    %c0_35 = arith.constant 0 : index
    %c0_36 = arith.constant 0 : index
    %36 = vector.load %arg4[%c1_34, %c0_35, %c0_36] : memref<3x128x128xbf16, #tpu.memory_space<vmem>>, vector<1x128x128xbf16>
    %37 = vector.shape_cast %36 : vector<1x128x128xbf16> to vector<128x128xbf16>
    %cst_37 = arith.constant dense<0.000000e+00> : vector<16x128xf32>
    %38 = tpu.matmul %35, %37, %cst_37 {dimension_numbers = #tpu.dot_dimension_numbers<[1], [0], [0], [1], [0, 0, 1, 1], [], []>} : vector<16x128xbf16>, vector<128x128xbf16>, vector<16x128xf32> -> vector<16x128xf32>
    %39 = arith.addf %34, %38 : vector<16x128xf32>
    %c17 = arith.constant 17 : index
    %c0_38 = arith.constant 0 : index
    %40 = vector.load %arg9[%c17, %c0_38] : memref<33x128xbf16, #tpu.memory_space<vmem>>, vector<16x128xbf16>
    %c2_39 = arith.constant 2 : index
    %c0_40 = arith.constant 0 : index
    %c0_41 = arith.constant 0 : index
    %41 = vector.load %arg4[%c2_39, %c0_40, %c0_41] : memref<3x128x128xbf16, #tpu.memory_space<vmem>>, vector<1x128x128xbf16>
    %42 = vector.shape_cast %41 : vector<1x128x128xbf16> to vector<128x128xbf16>
    %cst_42 = arith.constant dense<0.000000e+00> : vector<16x128xf32>
    %43 = tpu.matmul %40, %42, %cst_42 {dimension_numbers = #tpu.dot_dimension_numbers<[1], [0], [0], [1], [0, 0, 1, 1], [], []>} : vector<16x128xbf16>, vector<128x128xbf16>, vector<16x128xf32> -> vector<16x128xf32>
    %44 = arith.addf %39, %43 : vector<16x128xf32>
    %c0_43 = arith.constant 0 : index
    %c0_44 = arith.constant 0 : index
    %45 = vector.load %arg5[%c0_43, %c0_44] : memref<1x128xf32, #tpu.memory_space<vmem>>, vector<1x128xf32>
    %46 = vector.broadcast %45 : vector<1x128xf32> to vector<16x128xf32>
    %47 = arith.addf %44, %46 : vector<16x128xf32>
    %c0_45 = arith.constant 0 : index
    %c1_46 = arith.constant 1 : index
    %c0_47 = arith.constant 0 : index
    %48 = vector.load %arg1[%c0_45, %c1_46, %c0_47] : memref<1x18x72xbf16, #tpu.memory_space<vmem>>, vector<1x16x72xbf16>
    %49 = vector.shape_cast %48 : vector<1x16x72xbf16> to vector<16x72xbf16>
    %c0_48 = arith.constant 0 : index
    %c0_49 = arith.constant 0 : index
    %50 = vector.load %arg6[%c0_48, %c0_49] : memref<72x128xbf16, #tpu.memory_space<vmem>>, vector<72x128xbf16>
    %cst_50 = arith.constant dense<0.000000e+00> : vector<16x128xf32>
    %51 = tpu.matmul %49, %50, %cst_50 {dimension_numbers = #tpu.dot_dimension_numbers<[1], [0], [0], [1], [0, 0, 1, 1], [], []>} : vector<16x72xbf16>, vector<72x128xbf16>, vector<16x128xf32> -> vector<16x128xf32>
    %c0_51 = arith.constant 0 : index
    %c0_52 = arith.constant 0 : index
    %52 = vector.load %arg7[%c0_51, %c0_52] : memref<1x128xf32, #tpu.memory_space<vmem>>, vector<1x128xf32>
    %53 = vector.broadcast %52 : vector<1x128xf32> to vector<16x128xf32>
    %54 = arith.addf %51, %53 : vector<16x128xf32>
    %55 = arith.addf %47, %54 : vector<16x128xf32>
    %cst_53 = arith.constant 0.000000e+00 : f32
    %56 = vector.broadcast %cst_53 : f32 to vector<16x128xf32>
    %57 = arith.maximumf %55, %56 : vector<16x128xf32>
    %c0_54 = arith.constant 0 : index
    %c0_55 = arith.constant 0 : index
    %c0_56 = arith.constant 0 : index
    %58 = vector.load %arg8[%c0_54, %c0_55, %c0_56] : memref<1x16x128xf32, #tpu.memory_space<vmem>>, vector<1x16x128xf32>
    %59 = vector.shape_cast %58 : vector<1x16x128xf32> to vector<16x128xf32>
    %60 = vector.shape_cast %57 : vector<16x128xf32> to vector<1x16x128xf32>
    tpu.vector_store %arg8[%c0_54, %c0_55, %c0_56], %60 {strides = array<i32>} : memref<1x16x128xf32, #tpu.memory_space<vmem>>, vector<1x16x128xf32>,
    return
  }
  func.func @transform_0(%arg0: i32) -> (i32, i32, i32) {
    %c0_i32 = arith.constant 0 : i32
    %c0_i32_0 = arith.constant 0 : i32
    %c0_i32_1 = arith.constant 0 : i32
    return %arg0, %c0_i32, %c0_i32_0 : i32, i32, i32
  }
  func.func @transform_1(%arg0: i32) -> (i32, i32, i32) {
    %c0_i32 = arith.constant 0 : i32
    %c0_i32_0 = arith.constant 0 : i32
    %c0_i32_1 = arith.constant 0 : i32
    %c0_i32_2 = arith.constant 0 : i32
    return %c0_i32, %c0_i32_0, %c0_i32_1 : i32, i32, i32
  }
  func.func @transform_2(%arg0: i32) -> (i32, i32) {
    %c0_i32 = arith.constant 0 : i32
    %c0_i32_0 = arith.constant 0 : i32
    %c0_i32_1 = arith.constant 0 : i32
    return %c0_i32, %c0_i32_0 : i32, i32
  }
  func.func @transform_3(%arg0: i32) -> (i32, i32, i32) {
    %c0_i32 = arith.constant 0 : i32
    %c0_i32_0 = arith.constant 0 : i32
    %c0_i32_1 = arith.constant 0 : i32
    %c0_i32_2 = arith.constant 0 : i32
    return %c0_i32, %c0_i32_0, %c0_i32_1 : i32, i32, i32
  }
  func.func @transform_4(%arg0: i32) -> (i32, i32) {
    %c0_i32 = arith.constant 0 : i32
    %c0_i32_0 = arith.constant 0 : i32
    %c0_i32_1 = arith.constant 0 : i32
    return %c0_i32, %c0_i32_0 : i32, i32
  }
  func.func @transform_5(%arg0: i32) -> (i32, i32) {
    %c0_i32 = arith.constant 0 : i32
    %c0_i32_0 = arith.constant 0 : i32
    %c0_i32_1 = arith.constant 0 : i32
    return %c0_i32, %c0_i32_0 : i32, i32
  }
  func.func @transform_6(%arg0: i32) -> (i32, i32) {
    %c0_i32 = arith.constant 0 : i32
    %c0_i32_0 = arith.constant 0 : i32
    %c0_i32_1 = arith.constant 0 : i32
    return %c0_i32, %c0_i32_0 : i32, i32
  }
  func.func @transform_7(%arg0: i32) -> (i32, i32, i32) {
    %c0_i32 = arith.constant 0 : i32
    %c0_i32_0 = arith.constant 0 : i32
    %c0_i32_1 = arith.constant 0 : i32
    return %arg0, %c0_i32, %c0_i32_0 : i32, i32, i32
  }
}

</mosaic_0001>

<bundles_post_ra>
// kernel: tpu_custom_call.1
= control target key start
LH: loop header
LB: loop body
LE: loop exit
PB: predicated region body
PF: predicated region fallthrough
CT: control target
= control target key end

     0   :  { %12 = vsyncpa [#allocation4], 0  ;;  %s2074_s0 = inlined_call_operand.vmem [shape: bf16[2,18,72], index: 0, kind: input, shape index: {}]   ;;  %s2075_s1 = inlined_call_operand.hbm [shape: bf16[3,72,128], index: 1, kind: input, shape index: {}]   ;;  %s2076_s2 = inlined_call_operand.vmem [shape: f32[1,128], index: 2, kind: input, shape index: {}]   ;;  %s2077_s3 = inlined_call_operand.hbm [shape: bf16[3,128,128], index: 3, kind: input, shape index: {}]   ;;  %s2078_s4 = inlined_call_operand.vmem [shape: f32[1,128], index: 4, kind: input, shape index: {}]   ;;  %s2079_s5 = inlined_call_operand.vmem [shape: bf16[72,128], index: 5, kind: input, shape index: {}]   ;;  %s2080_s6 = inlined_call_operand.vmem [shape: f32[1,128], index: 6, kind: input, shape index: {}]   ;;  %s2081_s7 = inlined_call_operand.hbm [shape: f32[2,16,128], index: 7, kind: output, shape index: {}]  }
   0x1   :  { %13 = vsyncpa [#allocation7], 0 }
   0x2   :  { %14 = vsyncpa [#allocation5], 0 }
   0x3   :  { %16 = vsyncpa [#allocation5 + $0x1], 0  ;;  %s1794_s24 = smov 0   ;;  %s1796_s25 = smov 0  }
   0x4   :  { %s1798_s26 = smov 0   ;;  %s1800_s27 = smov 0  }
   0x5 LB: > { %s1815_s28 = sadd.s32 4294967295, %s1743_s27   ;;  %s1228_s29 = sadd.s32 4294967294, %s1743_s27   ;;  %s1743_s27 = sphi %s1800_s27, %s2101_s27   ;;  %s1739_s26 = sphi %s1798_s26, %s2100_s26   ;;  %s1735_s25 = sphi %s1796_s25, %s2099_s25   ;;  %s1731_s24 = sphi %s1794_s24, %s2098_s24  }
   0x6   : > { %s1819_s30 = sadd.s32 1, %s1743_s27   ;;  %s181_s8 = sadd.s32 1, %s1739_s26 }
   0x7   : > { %s178_s9 = ssub.s32 %s1743_s27, %s1819_s30  ;;  %p191_p0 = scmp.ne.s32.totalorder %s1739_s26, %s1735_s25 }
   0x8   : > { %p179_p1 = scmp.eq.s32.totalorder %s178_s9, 0  ;;  %p192_p2 = scmp.eq.s32.totalorder %s1815_s28, 1 }
   0x9   : > { %p197_p3 = scmp.ne.s32.totalorder %s1735_s25, %s1731_s24  ;;  %p198_p4 = scmp.eq.s32.totalorder %s1228_s29, 1 }
   0xa   : > { %s1830_s10 = scalar_select %p179_p1, %s1739_s26, %s181_s8  }
   0xb   : > { %p1832_p5 = por %p192_p2, %p191_p0  ;;  %p1836_p6 = por %p198_p4, %p197_p3 }
   0xc   : > { %2085 = sst [smem:[#allocation12_spill]] %s1830_s10  ;;  %p1229_p7 = scmp.ge.s32.totalorder %s1743_s27, 1 }
   0xd   : > { %s2086_s11 = scalar_select %p1832_p5, 1, 0 }
   0xe   : > { %s2087_s12 = scalar_select %p1836_p6, 1, 0 }
   0xf   : > { %p205_p8 = scmp.lt.s32.totalorder %s1743_s27, 3  ;;  %p2082_p9 = scmp.eq.s32.totalorder %s1815_s28, 0 }
  0x10   : > { %s1745_s14 = smov [#allocation3]   ;;  %s1746_s17 = smov [#allocation6]  }
  0x11   : > { %p1843_p10 = pnand %p1229_p7, %p205_p8  ;;  %s217_s15 = sshll.u32 %s1745_s14, 4  ;;  %s218_s15 = int_to_ptr.vmem [resolvable:$true] %s217_s15 }
  0x12   : > { %s233_s18 = sshll.u32 %s1746_s17, 4  ;;  %s1617_s21 = scalar_lea.hbm %s2075_s1, 1728  ;;  %s1855_s18 = int_to_ptr.vmem [resolvable:$true] %s233_s18 }
  0x13   : > { %s2088_s13 = scalar_select %p1843_p10, 1, 0 }
  0x14   : > { %p1507_p11 = pneg %p1843_p10  ;;  %p1618_p13 = scmp.ne.s32.totalorder %s2075_s1, %s1617_s21 }
  0x15   : > { %p1624_p3 = scmp.lt.u32.totalorder %s1617_s21, %s2075_s1 }
  0x16   : > { %p1851_p12 = pnand %p2082_p9, %p1507_p11 }
  0x18   : > { %p1619_p0 = pneg %p1851_p12 }
  0x1a   : > { %p1620_p1 = pnand %p1619_p0, %p1618_p13 }
  0x1c   : > { %p1621_p2 = pneg %p1620_p1 }
  0x1e   : > { %p1626_p4 = pnand %p1624_p3, %p1621_p2 }
  0x20   : > { %1629 = shalt.err (!%p1626_p4)
}
  0x21   : > { %s1630_s9 = scalar_lea.vmem %s218_s15, 1728  ;;  %p1638_p9 = scmp.lt.s32.totalorder %s218_s15, %s218_s15 }
  0x22   : > { %p1631_p7 = scmp.ne.s32.totalorder %s218_s15, %s1630_s9  ;;  %p1639_p6 = scmp.lt.s32.totalorder %s1630_s9, %s1630_s9 }
  0x24   : > { %p1633_p8 = pnand %p1631_p7, %p1619_p0  ;;  %p1640_p5 = por %p1639_p6, %p1638_p9 }
  0x26   : > { %p1634_p11 = pneg %p1633_p8 }
  0x28   : > { %p1641_p10 = pnand %p1640_p5, %p1634_p11 }
  0x2a   : > { %1644 = shalt.err (!%p1641_p10)
}
  0x2b   : > { %s1747_s14 = smov 64   ;;  %s1748_s17 = smov 4  }
  0x2c   : > { %1510 = dma.hbm_to_vmem [thread:$0]  (!%p1851_p12), %s2075_s1, 1728, %s218_s15, [#allocation4], %s1747_s14, %s1747_s14, %s1748_s17  }
  0x2d   : > { %s1645_s23 = scalar_lea.hbm %s2077_s3, 3072 }
  0x2e   : > { %p1646_p13 = scmp.ne.s32.totalorder %s2077_s3, %s1645_s23  ;;  %p1652_p9 = scmp.lt.u32.totalorder %s1645_s23, %s2077_s3 }
  0x30   : > { %p1648_p5 = pnand %p1646_p13, %p1619_p0 }
  0x32   : > { %p1649_p6 = pneg %p1648_p5 }
  0x34   : > { %p1654_p10 = pnand %p1652_p9, %p1649_p6 }
  0x36   : > { %1657 = shalt.err (!%p1654_p10)
}
  0x37   : > { %s1658_s15 = scalar_lea.vmem %s1855_s18, 3072  ;;  %p1666_p4 = scmp.lt.s32.totalorder %s1855_s18, %s1855_s18 }
  0x38   : > { %p1659_p1 = scmp.ne.s32.totalorder %s1855_s18, %s1658_s15  ;;  %p1667_p7 = scmp.lt.s32.totalorder %s1658_s15, %s1658_s15 }
  0x3a   : > { %p1661_p2 = pnand %p1659_p1, %p1619_p0  ;;  %p1668_p8 = por %p1667_p7, %p1666_p4 }
  0x3c   : > { %p1662_p3 = pneg %p1661_p2 }
  0x3e   : > { %p1669_p11 = pnand %p1668_p8, %p1662_p3 }
  0x40   : > { %1672 = shalt.err (!%p1669_p11)
}
  0x41   : > { %1513 = dma.hbm_to_vmem [thread:$0]  (!%p1851_p12), %s2077_s3, 3072, %s1855_s18, [#allocation7], %s1747_s14, %s1747_s14, %s1748_s17  }
  0x42   : > { %p2090_p13 = scmp.ne.s32.totalorder %s2088_s13, 0 }
  0x43   : > { %p2091_p5 = scmp.eq.s32.totalorder (!%p2090_p13), %s1815_s28, 0 }
  0x44   : > { %266 = sbr.rel (%p2090_p13) target bundleno = 666 (0x29a), region = 48 }
  0x4b   : > { %1718 = dma.done.wait (%p2091_p5), [#allocation4], 1728   ;;  %p2092_p0 = pmov %p2091_p5 }
  0x4d   : > { %1720 = vsyncadd (%p2092_p0), [#allocation4], 4294965568  ;;  %p2093_p6 = pmov %p2092_p0 }
  0x4e   : > { %p2094_p9 = pmov %p2092_p0 }
  0x4f   : > { %1722 = dma.done.wait (%p2093_p6), [#allocation7], 3072  }
  0x50   : > { %1724 = vsyncadd (%p2094_p9), [#allocation7], 4294964224  ;;  %p302_p10 = scmp.lt.s32.totalorder %s1815_s28, 1  ;;  %v1749_v0 = vmov 0.0   ;;  %vm1750_vm0 = vmmov 0   ;;  %v1563_v1 = vld [vmem:[#allocation3 + $0x24] sm:$0xff]  }
  0x51   : > { %1366 = vmatprep.subr.bf16.mxu0 %v1749_v0  ;;  %1376 = vmatprep.mubr.msk.bf16.mxu0 %vm1750_vm0, %v1749_v0  ;;  %v1564_v2 = vld [vmem:[#allocation3 + $0x2c] sm:$0xff]   ;;  %v1565_v5 = vld [vmem:[#allocation3 + $0x34] sm:$0xff]   ;;  %vm394_vm1 = vcmask 1043456   ;;  %v1566_v9 = vld [vmem:[#allocation3 + $0x3c] sm:$0xff]   ;;  %vm350_vm2 = vsmask.f32 7424 }
  0x52   : > { %s303_s13 = scalar_select %p302_p10, %s1815_s28, 1  ;;  %1428 = vmatprep.subr.bf16.mxu1 %v1749_v0  ;;  %1444 = vmatprep.mubr.msk.bf16.mxu1 %vm1750_vm0, %v1749_v0  ;;  %v1567_v13 = vld [vmem:[#allocation3 + $0x44] ss:$0 sps:$4 sm:$0xff]   ;;  %v1574_v17 = vld [vmem:[#allocation3 + $0x20] ss:$0 sps:$4 sm:$0xff]   ;;  %vm390_vm3 = vcmask 588800  }
  0x53   : > { %1367 = vmatpush3.bf16.msra.mxu0 %v1563_v1  ;;  %v396_v16 = vsel %vm394_vm1, %v1567_v13, 0  ;;  %v1570_v18 = vld [vmem:[#allocation3] sm:$0xff]   ;;  %v469_v20 = vsel %vm394_vm1, %v1574_v17, 0  ;;  %v1571_v21 = vld [vmem:[#allocation3 + $0x8] sm:$0xff]   ;;  %v1572_v22 = vld [vmem:[#allocation3 + $0x10] sm:$0xff]   ;;  %vm526_vm4 = vcmask 1046528  }
  0x54   : > { %s1496_s16 = smul.u32 12, %s303_s13  ;;  %1368 = vmatprep.subr.bf16.mxu0 %v1749_v0  ;;  %v1573_v23 = vld [vmem:[#allocation3 + $0x18] sm:$0xff]   ;;  %v1575_v24 = vld [vmem:[#allocation3 + $0x48] sm:$0xff]   ;;  %v1576_v25 = vld [vmem:[#allocation3 + $0x50] sm:$0xff]   ;;  %vm308_vm5 = vcmask 1043459   ;;  %vm314_vm8 = vcmask 1040384  }
  0x55   : > { %v1577_v26 = vld [vmem:[#allocation3 + $0x58] sm:$0xff]   ;;  %v1578_v28 = vld [vmem:[#allocation3 + $0x60] sm:$0xff]   ;;  %v1579_v30 = vld [vmem:[#allocation3 + $0x68] ss:$0 sps:$4 sm:$0xff]   ;;  %vm309_vm6 = vsmask.f32 7950 }
  0x56   : > { %s1925_s17 = scalar_lea.vmem %s2074_s0, %s1496_s16  ;;  %v561_v33 = vsel %vm394_vm1, %v1579_v30, 0  ;;  %v1581_v35 = vld [vmem:[#allocation6 + $0x40] sm:$0xff]   ;;  %v1582_v37 = vld [vmem:[#allocation6 + $0x48] sm:$0xff]   ;;  %v1584_v38 = vld [vmem:[#allocation6 + $0x50] sm:$0xff]   ;;  %vm315_vm9 = vsmask.f32 256 }
  0x57   : > { %v320_v3 = vld [vmem:[%s1925_s17] sm:$0xf]  ;;  %v321_v4 = vld [vmem:[%s1925_s17 + $0x4] sm:$0xf]  ;;  %1369 = vmatpush3.bf16.msra.mxu0 %v1564_v2  ;;  %v1583_v36 = vld [vmem:[#allocation6] sm:$0xff]   ;;  %s1308_s8 = sshll.u32 %s1815_s28, 8 }
  0x58   : > { %v1238_v6 = vcombine.low %v320_v3, %v321_v4  ;;  %v1931_v7 = vld [vmem:[%s1925_s17 + $0x8] ss:$0 sps:$4 sm:$0x11]   ;;  %1370 = vmatprep.subr.bf16.mxu0 %v1749_v0  ;;  %v512_v27 = vld [vmem:[%s1925_s17] sm:$0xe]  ;;  %1429 = vmatpush3.bf16.msra.mxu1 %v1583_v36  ;;  %v1585_v39 = vld [vmem:[#allocation6 + $0x8] sm:$0xff]   ;;  %s2031_s10 = scalar_lea.hbm %s2081_s7, %s1308_s8 }
  0x59   : > { %v359_v12 = vshll.u32 %v1931_v7, 16  ;;  %v1252_v29 = vcombine.low %v512_v27, %v321_v4  ;;  %v528_v32 = vrot.slane %v1931_v7, 1  ;;  %1430 = vmatprep.subr.bf16.mxu1 %v1749_v0  ;;  %v1586_v40 = vld [vmem:[#allocation6 + $0x58] sm:$0xff]   ;;  %v1587_v41 = vld [vmem:[#allocation6 + $0x10] sm:$0xff]   ;;  %v1588_v42 = vld [vmem:[#allocation6 + $0x60] sm:$0xff]   ;;  %p2095_p1 = scmp.ne.s32.totalorder %s2086_s11, 0 }
  0x5a   : > { %v354_v8 = vshll.u32 %v1238_v6, 16  ;;  %v352_v10 = vshrl.u32 %v1238_v6, 16  ;;  %v1589_v43 = vld [vmem:[#allocation6 + $0x18] sm:$0xff]   ;;  %v1590_v44 = vld [vmem:[#allocation6 + $0x68] sm:$0xff]   ;;  %vm310_vm7 = vmand %vm308_vm5, %vm309_vm6  ;;  %vm762_vm11 = vsmask.f32 4352 }
  0x5b   : > { %1371 = vmatpush3.bf16.msra.mxu0 %v1565_v5  ;;  %v361_v15 = vrot.slane %v359_v12, 1  ;;  %v527_v31 = vrot.slane %v1252_v29, 1  ;;  %v311_v45 = vld [vmem:[#allocation2 + $0x4] sm:$0x8]  ;;  %v1592_v48 = vld [vmem:[#allocation6 + $0x70] sm:$0xff]   ;;  %v1593_v49 = vld [vmem:[#allocation6 + $0x28] sm:$0xff]  }
  0x5c   : > { %v356_v11 = vrot.slane %v354_v8, 1  ;;  %1372 = vmatprep.subr.bf16.mxu0 %v1749_v0  ;;  %1431 = vmatpush3.bf16.msra.mxu1 %v1585_v39  ;;  %v1591_v46 = vld [vmem:[#allocation6 + $0x20] sm:$0xff]   ;;  %v312_v47 = vsel %vm310_vm7, 0, %v311_v45  ;;  %vm316_vm10 = vmand %vm314_vm8, %vm315_vm9  ;;  %v317_v50 = vld [vmem:[#allocation2 + $0x10] sm:$0x1]  ;;  %s1751_s28 = smov [#allocation8]  }
  0x5d   : > { %v529_v34 = vsel %vm526_vm4, %v527_v31, %v528_v32  ;;  %1432 = vmatprep.subr.bf16.mxu1 %v1749_v0  ;;  %313 = vst [vmem:[#allocation2 + $0x4] sm:$0x8] %v312_v47  ;;  %v318_v51 = vsel %vm316_vm10, 0, %v317_v50  ;;  %v1594_v52 = vld [vmem:[#allocation6 + $0x78] sm:$0xff]   ;;  %v1595_v53 = vld [vmem:[#allocation6 + $0x30] sm:$0xff]   ;;  %v1600_v30 = vld [vmem:[#allocation6 + $0x80] sm:$0xff]  }
  0x5e   : > { %v357_v14 = vor.u32 %v356_v11, %v352_v10  ;;  %319 = vst [vmem:[#allocation2 + $0x10] sm:$0x1] %v318_v51  ;;  %v1599_v54 = vld [vmem:[#allocation6 + $0x38] sm:$0xff]   ;;  %v1601_v32 = vld [vmem:[#allocation6 + $0x88] sm:$0xff]   ;;  %s1677_s16 = sshll.u32 %s1751_s28, 4  ;;  %s1678_s16 = int_to_ptr.vmem [resolvable:$false] %s1677_s16 }
  0x5f   : > { %1373 = vmatpush3.bf16.msra.mxu0 %v1566_v9  ;;  %v1259_v3 = vld [vmem:[%s2076_s2] ss:$0 sm:$0xff]  ;;  %v1612_v51 = vld [vmem:[%s2079_s5 + $0x10] sm:$0xff]   ;;  %s1679_s18 = scalar_lea.vmem %s1678_s16, 512 }
  0x60   : > { %1374 = vmatprep.subr.bf16.mxu0 %v1749_v0  ;;  %v362_v19 = vsel %vm350_vm2, %v357_v14, %v361_v15  ;;  %1433 = vmatpush3.bf16.msra.mxu1 %v1587_v41  ;;  %v1610_v47 = vld [vmem:[%s2079_s5] sm:$0xff]  }
  0x61   : > { %1434 = vmatprep.subr.bf16.mxu1 %v1749_v0  ;;  %v1615_v50 = vld [vmem:[%s1925_s17] sm:$0xff]  }
  0x63   : > { %1375 = vmatpush3.bf16.msra.mxu0 %v396_v16 }
  0x64   : > { %1380 = vmatprep.subr.bf16.mxu0 %v1749_v0  ;;  %1435 = vmatpush3.bf16.msra.mxu1 %v1589_v43  ;;  %v627_v14 = vld [vmem:[#allocation2 + $0x4] sm:$0x8]  ;;  %v1607_v43 = vld [vmem:[#allocation6 + $0xb8] sm:$0xff]  }
  0x65   : > { %1436 = vmatprep.subr.bf16.mxu1 %v1749_v0 }
  0x66   : > { %1377 = vmatmul.mubr.msk.bf16.vlgmr.msra.gmra.mrb[0].mxu0 %vm390_vm3, %v362_v19 }
  0x67   : > { %1381 = vmatpush3.bf16.msra.mxu0 %v1570_v18  ;;  %1390 = vmatprep.mubr.msk.bf16.mxu0 %vm1750_vm0, %v1749_v0 }
  0x68   : > { %1382 = vmatprep.subr.bf16.mxu0 %v1749_v0  ;;  %1437 = vmatpush3.bf16.msra.mxu1 %v1591_v46 }
  0x69   : > { %1438 = vmatprep.subr.bf16.mxu1 %v1749_v0 }
  0x6b   : > { %1383 = vmatpush3.bf16.msra.mxu0 %v1571_v21 }
  0x6c   : > { %1384 = vmatprep.subr.bf16.mxu0 %v1749_v0  ;;  %1439 = vmatpush3.bf16.msra.mxu1 %v1593_v49  ;;  %v1611_v49 = vld [vmem:[%s2079_s5 + $0x8] sm:$0xff]  }
  0x6d   : > { %1440 = vmatprep.subr.bf16.mxu1 %v1749_v0 }
  0x6f   : > { %1385 = vmatpush3.bf16.msra.mxu0 %v1572_v22 }
  0x70   : > { %1386 = vmatprep.subr.bf16.mxu0 %v1749_v0  ;;  %1441 = vmatpush3.bf16.msra.mxu1 %v1595_v53  ;;  %v1041_v53 = vshll.u32 %v1615_v50, 16 }
  0x71   : > { %1442 = vmatprep.subr.bf16.mxu1 %v1749_v0 }
  0x73   : > { %1387 = vmatpush3.bf16.msra.mxu0 %v1573_v23 }
  0x74   : > { %1388 = vmatprep.subr.bf16.mxu0 %v1749_v0  ;;  %1443 = vmatpush3.bf16.msra.mxu1 %v1599_v54  ;;  %v1613_v54 = vld [vmem:[%s2079_s5 + $0x18] sm:$0xff]  }
  0x75   : > { %1448 = vmatprep.subr.bf16.mxu1 %v1749_v0 }
  0x77   : > { %1389 = vmatpush3.bf16.msra.mxu0 %v469_v20 }
  0x78   : > { %1394 = vmatprep.subr.bf16.mxu0 %v1749_v0 }
  0x7a   : > { %1391 = vmatmul.mubr.msk.bf16.vlgmr.msra.gmra.mrb[4].mxu0 %vm390_vm3, %v1238_v6 }
  0x7b   : > { %1395 = vmatpush3.bf16.msra.mxu0 %v1575_v24  ;;  %1404 = vmatprep.mubr.msk.bf16.mxu0 %vm1750_vm0, %v1749_v0 }
  0x7c   : > { %1396 = vmatprep.subr.bf16.mxu0 %v1749_v0 }
  0x7f   : > { %1397 = vmatpush3.bf16.msra.mxu0 %v1576_v25 }
  0x80   : > { %1398 = vmatprep.subr.bf16.mxu0 %v1749_v0 }
  0x83   : > { %1399 = vmatpush3.bf16.msra.mxu0 %v1577_v26 }
  0x84   : > { %1400 = vmatprep.subr.bf16.mxu0 %v1749_v0 }
  0x87   : > { %1401 = vmatpush3.bf16.msra.mxu0 %v1578_v28 }
  0x88   : > { %1402 = vmatprep.subr.bf16.mxu0 %v1749_v0 }
  0x8b   : > { %1403 = vmatpush3.bf16.msra.mxu0 %v561_v33  ;;  %v1602_v33 = vld [vmem:[#allocation6 + $0x90] sm:$0xff]  }
  0x8c   : > { %1408 = vmatprep.subr.bf16.mxu0 %v1749_v0 }
  0x8e   : > { %1405 = vmatmul.mubr.msk.bf16.vlgmr.msra.gmra.mrb[8].mxu0 %vm390_vm3, %v529_v34  ;;  %v1603_v34 = vld [vmem:[#allocation6 + $0x98] sm:$0xff]  }
  0x8f   : > { %1424 = vmatprep.mubr.msk.bf16.mxu0 %vm1750_vm0, %v1749_v0  ;;  %1409 = vmatpush3.bf16.msra.mxu0 %v1581_v35  ;;  %v1604_v35 = vld [vmem:[#allocation6 + $0xa0] sm:$0xff]  }
  0x90   : > { %1410 = vmatprep.subr.bf16.mxu0 %v1749_v0 }
  0x93   : > { %1411 = vmatpush3.bf16.msra.mxu0 %v1582_v37  ;;  %v1605_v37 = vld [vmem:[#allocation6 + $0xa8] sm:$0xff]  }
  0x94   : > { %1412 = vmatprep.subr.bf16.mxu0 %v1749_v0 }
  0x97   : > { %1413 = vmatpush3.bf16.msra.mxu0 %v1584_v38  ;;  %v1609_v38 = vld [vmem:[#allocation2 + $0x10] ss:$0 sps:$4 sm:$0x11]  }
  0x98   : > { %1414 = vmatprep.subr.bf16.mxu0 %v1749_v0 }
  0x9b   : > { %1415 = vmatpush3.bf16.msra.mxu0 %v1586_v40  ;;  %v1606_v40 = vld [vmem:[#allocation6 + $0xb0] sm:$0xff]  }
  0x9c   : > { %1416 = vmatprep.subr.bf16.mxu0 %v1749_v0 }
  0x9f   : > { %1417 = vmatpush3.bf16.msra.mxu0 %v1588_v42  ;;  %v906_v42 = vshll.u32 %v1609_v38, 16 }
  0xa0   : > { %1418 = vmatprep.subr.bf16.mxu0 %v1749_v0 }
  0xa1   : > { %v908_v46 = vrot.slane %v906_v42, 1 }
  0xa3   : > { %1419 = vmatpush3.bf16.msra.mxu0 %v1590_v44 }
  0xa4   : > { %1420 = vmatprep.subr.bf16.mxu0 %v1749_v0 }
  0xa7   : > { %1421 = vmatpush3.bf16.msra.mxu0 %v1592_v48 }
  0xa8   : > { %1422 = vmatprep.subr.bf16.mxu0 %v1749_v0 }
  0xab   : > { %1423 = vmatpush3.bf16.msra.mxu0 %v1594_v52  ;;  %v1616_v52 = vld [vmem:[%s1925_s17 + $0x8] ss:$0 sps:$4 sm:$0x11]   ;;  %s299_s17 = sand.u32 1, %s1735_s25  }
  0xac   : > { %s1236_s20 = sshll.u32 %s299_s17, 4  ;;  %s2033_s19 = scalar_lea.sflag [#allocation5], %s299_s17 }
  0xad   : > { %s301_s23 = scalar_lea.vmem [#allocation8], %s1236_s20 }
  0xae   : > { %s1144_s29 = sshll.u32 %s301_s23, 4  ;;  %s2026_s29 = int_to_ptr.vmem [resolvable:$true] %s1144_s29 }
  0xaf   : > { %s1673_s13 = scalar_lea.vmem %s2026_s29, 256  ;;  %p1680_p4 = scmp.lt.s32.totalorder %s2026_s29, %s1678_s16 }
  0xb0   : > { %p1674_p12 = scmp.ne.s32.totalorder %s2026_s29, %s1673_s13  ;;  %p1681_p7 = scmp.lt.s32.totalorder %s1679_s18, %s1673_s13 }
  0xb2   : > { %p1675_p2 = pnand %p1674_p12, %p2095_p1  ;;  %p1682_p8 = por %p1681_p7, %p1680_p4 }
  0xb4   : > { %p1676_p3 = pneg %p1675_p2 }
  0xb6   : > { %p1683_p11 = pnand %p1682_p8, %p1676_p3 }
 0x139   : > { %v432_v55 = vpop.f32.mrb[0].mxu0 }
 0x13a   : > { %v1378_v56 = vpop.f32.mrb[1].mxu0 }
 0x13b   : > { %v435_v57 = vpop.f32.mrb[2].mxu0  ;;  %v1043_v56 = vrot.slane %v1041_v53, 1 }
 0x13c   : > { %v1379_v58 = vpop.f32.mrb[3].mxu0 }
 0x13d   : > { %v1614_v58 = vld [vmem:[%s2079_s5 + $0x20] ss:$0 sps:$4 sm:$0xff]  }
 0x14d   : > { %v505_v59 = vpop.f32.mrb[4].mxu0 }
 0x14e   : > { %v506_v60 = vadd.f32 %v505_v59, %v432_v55  ;;  %v1392_v61 = vpop.f32.mrb[5].mxu0  ;;  %v1039_v55 = vshrl.u32 %v1615_v50, 16 }
 0x14f   : > { %v508_v62 = vpop.f32.mrb[6].mxu0  ;;  %v1081_v61 = vsel %vm394_vm1, %v1614_v58, 0 }
 0x150   : > { %v509_v63 = vadd.f32 %v508_v62, %v435_v57  ;;  %v1393_v1 = vpop.f32.mrb[7].mxu0  ;;  %v1046_v57 = vshll.u32 %v1616_v52, 16  ;;  %v1044_v59 = vor.u32 %v1043_v56, %v1039_v55 }
 0x161   : > { %v597_v2 = vpop.f32.mrb[8].mxu0 }
 0x162   : > { %v604_v4 = vadd.f32 %v597_v2, %v506_v60  ;;  %v1406_v5 = vpop.f32.mrb[9].mxu0  ;;  %v1048_v60 = vrot.slane %v1046_v57, 1 }
 0x163   : > { %v600_v6 = vpop.f32.mrb[10].mxu0 }
 0x164   : > { %v613_v7 = vadd.f32 %v1259_v3, %v604_v4  ;;  %v605_v8 = vadd.f32 %v600_v6, %v509_v63  ;;  %v1407_v9 = vpop.f32.mrb[11].mxu0  ;;  %v1049_v62 = vsel %vm350_vm2, %v1044_v59, %v1048_v60  ;;  %v1291_v4 = vld [vmem:[%s2078_s4] ss:$0 sm:$0xff] }
 0x166   : > { %v614_v10 = vadd.f32 %v1259_v3, %v605_v8  ;;  %v615_v11 = vmax.f32 %v613_v7, 0.0 }
 0x168   : > { %v616_v12 = vmax.f32 %v614_v10, 0.0 }
 0x16a   : > { %v1312_v13 = vpack.c.bf16 %v616_v12, %v615_v11 }
 0x16c   : > { %1314 = vst [vmem:[#allocation2 + $0x8] sm:$0xff] %v1312_v13  }
 0x173   : > { %v628_v15 = vld [vmem:[#allocation2 + $0x8] sm:$0xf]  ;;  %v629_v16 = vld [vmem:[#allocation2 + $0xc] sm:$0xf] }
 0x174   : > { %v1262_v17 = vcombine.low %v628_v15, %v629_v16  ;;  %v1271_v18 = vcombine.low %v627_v14, %v628_v15  ;;  %v1272_v19 = vcombine.low %v629_v16, %v629_v16  ;;  %v1608_v36 = vld [vmem:[#allocation2 + $0x8] sm:$0xff]  }
 0x175   : > { %v901_v39 = vshll.u32 %v1608_v36, 16  ;;  %v899_v44 = vshrl.u32 %v1608_v36, 16 }
 0x176   : > { %1425 = vmatmul.mubr.bf16.vlgmr.msra.gmra.mrb[12].mxu0 %v1262_v17  ;;  %v764_v20 = vshrl.u32 %v1271_v18, 16  ;;  %v767_v21 = vshll.u32 %v1271_v18, 16  ;;  %v772_v22 = vshrl.u32 %v1272_v19, 16  ;;  %v775_v23 = vshll.u32 %v1272_v19, 16 }
 0x177   : > { %v903_v41 = vrot.slane %v901_v39, 1 }
 0x178   : > { %v766_v24 = vrot.slane %v764_v20, 3  ;;  %v769_v25 = vrot.slane %v767_v21, 4  ;;  %v774_v26 = vrot.slane %v772_v22, 3  ;;  %v777_v27 = vrot.slane %v775_v23, 4 }
 0x179   : > { %v904_v45 = vor.u32 %v903_v41, %v899_v44 }
 0x17a   : > { %v770_v28 = vor.u32 %v769_v25, %v766_v24  ;;  %v778_v29 = vor.u32 %v777_v27, %v774_v26 }
 0x17b   : > { %v909_v48 = vsel %vm350_vm2, %v904_v45, %v908_v46 }
 0x17c   : > { %v779_v31 = vsel %vm762_vm11, %v770_v28, %v778_v29 }
 0x17d   : > { %1445 = vmatmul.mubr.bf16.vlgmr.msra.gmra.mrb[0].mxu1 %v779_v31 }
 0x17e   : > { %1449 = vmatpush3.bf16.msra.mxu1 %v1600_v30  ;;  %1464 = vmatprep.mubr.msk.bf16.mxu1 %vm1750_vm0, %v1749_v0 }
 0x17f   : > { %1450 = vmatprep.subr.bf16.mxu1 %v1749_v0 }
 0x182   : > { %1451 = vmatpush3.bf16.msra.mxu1 %v1601_v32 }
 0x183   : > { %1452 = vmatprep.subr.bf16.mxu1 %v1749_v0 }
 0x186   : > { %1453 = vmatpush3.bf16.msra.mxu1 %v1602_v33 }
 0x187   : > { %1454 = vmatprep.subr.bf16.mxu1 %v1749_v0 }
 0x18a   : > { %1455 = vmatpush3.bf16.msra.mxu1 %v1603_v34 }
 0x18b   : > { %1456 = vmatprep.subr.bf16.mxu1 %v1749_v0 }
 0x18e   : > { %1457 = vmatpush3.bf16.msra.mxu1 %v1604_v35 }
 0x18f   : > { %1458 = vmatprep.subr.bf16.mxu1 %v1749_v0 }
 0x192   : > { %1459 = vmatpush3.bf16.msra.mxu1 %v1605_v37 }
 0x193   : > { %1460 = vmatprep.subr.bf16.mxu1 %v1749_v0 }
 0x196   : > { %1461 = vmatpush3.bf16.msra.mxu1 %v1606_v40 }
 0x197   : > { %1462 = vmatprep.subr.bf16.mxu1 %v1749_v0 }
 0x19a   : > { %1463 = vmatpush3.bf16.msra.mxu1 %v1607_v43 }
 0x19b   : > { %1468 = vmatprep.subr.bf16.mxu1 %v1749_v0 }
 0x19d   : > { %1465 = vmatmul.mubr.bf16.vlgmr.msra.gmra.mrb[0].mxu1 %v909_v48 }
 0x19e   : > { %1469 = vmatpush3.bf16.msra.mxu1 %v1610_v47  ;;  %1478 = vmatprep.mubr.msk.bf16.mxu1 %vm1750_vm0, %v1749_v0 }
 0x19f   : > { %1470 = vmatprep.subr.bf16.mxu1 %v1749_v0 }
 0x1a2   : > { %1471 = vmatpush3.bf16.msra.mxu1 %v1611_v49 }
 0x1a3   : > { %1472 = vmatprep.subr.bf16.mxu1 %v1749_v0 }
 0x1a6   : > { %1473 = vmatpush3.bf16.msra.mxu1 %v1612_v51 }
 0x1a7   : > { %1474 = vmatprep.subr.bf16.mxu1 %v1749_v0 }
 0x1aa   : > { %1475 = vmatpush3.bf16.msra.mxu1 %v1613_v54 }
 0x1ab   : > { %1476 = vmatprep.subr.bf16.mxu1 %v1749_v0  ;;  %v1292_v0 = vld [vmem:[%s2080_s6] ss:$0 sm:$0xff] }
 0x1ae   : > { %1477 = vmatpush3.bf16.msra.mxu1 %v1081_v61 }
 0x1b1   : > { %1479 = vmatmul.mubr.msk.bf16.vlgmr.msra.gmra.mrb[0].mxu1 %vm390_vm3, %v1049_v62 }
 0x249   : > { %v751_v63 = vpop.f32.mrb[12].mxu0 }
 0x24a   : > { %v1426_v1 = vpop.f32.mrb[13].mxu0  ;;  %v1482_v5 = vadd.f32 %v1291_v4, %v751_v63 }
 0x24b   : > { %v754_v2 = vpop.f32.mrb[14].mxu0 }
 0x24c   : > { %v1427_v3 = vpop.f32.mrb[15].mxu0  ;;  %v1485_v6 = vadd.f32 %v1291_v4, %v754_v2  ;;  %v1483_v7 = vadd.f32 %v1482_v5, %v1292_v0 }
 0x24e   : > { %v1486_v11 = vadd.f32 %v1485_v6, %v1292_v0 }
 0x284   : > { %v1117_v8 = vpop.f32.mrb[0].mxu1 }
 0x285   : > { %v1484_v9 = vadd.f32 %v1483_v7, %v1117_v8  ;;  %v1480_v10 = vpop.f32.mrb[1].mxu1 }
 0x286   : > { %v1120_v12 = vpop.f32.mrb[2].mxu1 }
 0x287   : > { %v1126_v13 = vmax.f32 %v1484_v9, 0.0  ;;  %v1487_v14 = vadd.f32 %v1486_v11, %v1120_v12  ;;  %v1481_v15 = vpop.f32.mrb[3].mxu1 }
 0x289   : > { %1128 = vst [vmem:[%s301_s23] sm:$0xff] %v1126_v13  ;;  %v1127_v16 = vmax.f32 %v1487_v14, 0.0 }
 0x28b   : > { %1129 = vst [vmem:[%s301_s23 + $0x8] sm:$0xff] %v1127_v16 }
 0x28c   : > { %1686 = shalt.err (!%p1683_p11)
}
 0x28d   : > { %s1687_s14 = scalar_lea.hbm %s2031_s10, 256  ;;  %s1691_s21 = scalar_lea.hbm %s2081_s7, 512 }
 0x28e   : > { %p1688_p13 = scmp.ne.s32.totalorder %s2031_s10, %s1687_s14  ;;  %p1692_p6 = scmp.lt.u32.totalorder %s2031_s10, %s2081_s7 }
 0x28f   : > { %p1693_p9 = scmp.lt.u32.totalorder %s1691_s21, %s1687_s14  ;;  %p1695_p12 = scmp.lt.u32.totalorder %s1687_s14, %s2031_s10 }
 0x290   : > { %p1689_p5 = pnand %p1688_p13, %p2095_p1 }
 0x291   : > { %p1694_p10 = por %p1693_p9, %p1692_p6 }
 0x292   : > { %p1690_p0 = pneg %p1689_p5 }
 0x293   : > { %p1696_p2 = por %p1695_p12, %p1694_p10 }
 0x295   : > { %p1697_p3 = pnand %p1696_p2, %p1690_p0 }
 0x297   : > { %1700 = shalt.err (!%p1697_p3)
}
 0x298   : > { %s1752_s8 = smov 128   ;;  %s1753_s9 = smov 8  }
 0x299   : > { %1505 = dma.vmem_to_hbm [thread:$0]  (%p2095_p1), %s2026_s29, 256, %s2031_s10, %s2033_s19, %s1752_s8, %s1752_s8, %s1753_s9  }
 0x29a PF: > { %p1522_p4 = scmp.ge.s32.totalorder %s1743_s27, 2  ;;  %s1159_s15 = sand.u32 1, %s1731_s24  }
 0x29b   : > { %p2096_p7 = scmp.ne.s32.totalorder %s2087_s12, 0  ;;  %s1160_s13 = scalar_lea.sflag [#allocation5], %s1159_s15 }
 0x29d   : > { %p1515_p8 = pnand %p1522_p4, %p2096_p7 }
 0x29f   : > { %1726 = dma.done.wait (!%p1515_p8), %s1160_s13, 256  }
 0x2a0   : > { %1728 = vsyncadd (!%p1515_p8), %s1160_s13, 4294967040  ;;  %s2097_s28 = sld [smem:[#allocation12_spill]]  ;;  %p19_p11 = scmp.ge.s32.totalorder %s1819_s30, 4  }
 0x2a1   : > { %s2098_s24 = smov %s1735_s25  ;;  %s2099_s25 = smov %s1739_s26 }
 0x2a2   : > { %s2101_s27 = smov %s1819_s30  ;;  %21 = sbr.rel (!%p19_p11) target bundleno = 5 (0x5), region = 96 }
 0x2a6   : > { %s2100_s26 = smov %s2097_s28 }
 0x2a9   :  { %1165 = vsyncpa [#allocation4], 1 }
 0x2aa   :  { %1167 = vsyncpa [#allocation4 + $0x1], 1 }
 0x2ab   :  { %1168 = vsyncpa [#allocation7], 1 }
 0x2ac   :  { %1169 = vsyncpa [#allocation5], 1 }
 0x2ad   :  { %1171 = vsyncpa [#allocation5 + $0x1], 1 }

</bundles_post_ra>
